<compile_context>
chip_gen: v7x
topology: tpu7x:2x2x1
jax: 0.10.0
libtpu: 0.0.40
codegen_flags: <defaults>
</compile_context>

<pallas_src>
import numpy as np
import jax
import jax.numpy as jnp
from jax.experimental import pallas as pl
from jax.experimental.pallas import tpu as pltpu


def _round_up(x, m):
    return ((x + m - 1) // m) * m


def _cdiv(a, b):
    return -(-a // b)


# ---------------------------------------------------------------------------
# Kernel
# ---------------------------------------------------------------------------
def actor_kernel(x_ref, w1_ref, b1_ref, w2_ref, b2_ref, w3_ref, b3_ref,
                 high_ref, o_ref):
    # Layer 1: bf16 x bf16 matmul on the MXU, f32 accumulation,
    # f32 bias + ReLU on the VPU, stored back as bf16 (halves VMEM traffic).
    h1 = jnp.dot(x_ref[...], w1_ref[...], preferred_element_type=jnp.float32)
    h1 = jnp.maximum(h1 + b1_ref[...], 0.0).astype(jnp.bfloat16)

    # Layer 2
    h2 = jnp.dot(h1, w2_ref[...], preferred_element_type=jnp.float32)
    h2 = jnp.maximum(h2 + b2_ref[...], 0.0).astype(jnp.bfloat16)

    # Layer 3 + tanh (EUP) scaled by action_space.high — f32 epilogue,
    # bf16 store (halves the dominant HBM writeback stream).
    a = jnp.dot(h2, w3_ref[...], preferred_element_type=jnp.float32)
    a = a + b3_ref[...]
    o_ref[...] = (jnp.tanh(a) * high_ref[...]).astype(o_ref.dtype)


# ---------------------------------------------------------------------------
# Parameter preparation: pad to lane-friendly shapes, cast weights to bf16.
# ---------------------------------------------------------------------------
def prepare_actor_params(params, action_high):
    """Zero-pad hidden/output dims to multiples of 128 and cast W to bf16.

    Zero padding is exact: padded hidden units see zero weights and zero bias,
    so ReLU keeps them at 0 and they contribute nothing downstream; padded
    action columns are sliced away by the wrapper.
    """
    w1, b1, w2, b2, w3, b3 = params
    obs = w1.shape[0]
    action_dim = w3.shape[1]
    l1p = _round_up(w1.shape[1], 128)     # 400 -> 512
    l2p = _round_up(w2.shape[1], 128)     # 300 -> 384 (3 x 128; do NOT pad to 512)
    ap = _round_up(action_dim, 128)       # 4   -> 128

    def pad2(a, shape):
        out = jnp.zeros(shape, a.dtype)
        return out.at[:a.shape[0], :a.shape[1]].set(a)

    def pad_row(a, n):
        out = jnp.zeros((1, n), a.dtype)
        return out.at[0, :a.shape[0]].set(a)

    w1p = pad2(w1, (obs, l1p)).astype(jnp.bfloat16)
    w2p = pad2(w2, (l1p, l2p)).astype(jnp.bfloat16)
    w3p = pad2(w3, (l2p, ap)).astype(jnp.bfloat16)
    b1p = pad_row(b1, l1p).astype(jnp.float32)
    b2p = pad_row(b2, l2p).astype(jnp.float32)
    b3p = pad_row(b3, ap).astype(jnp.float32)
    highp = pad_row(action_high, ap).astype(jnp.float32)
    return (w1p, b1p, w2p, b2p, w3p, b3p, highp), action_dim


# ---------------------------------------------------------------------------
# Batch tiling: big tiles, >=2 tiles when possible (v7x), minimal ragged pad.
# ---------------------------------------------------------------------------
def _choose_batch_tiling(B, max_tile):
    """Returns (tb, b_pad, num_tiles).

    - tiles are capped at `max_tile` rows (default 1024: big enough to hide
      the ~600-cycle per-step overhead, small enough for v5e's 16 MiB scoped
      VMEM with bf16 I/O + bf16 intermediates),
    - at least 2 tiles when the batch can be split into >=8-row tiles, so the
      "parallel" axis can shard across v7x's two TensorCores,
    - tb = round_up(ceil(B / num_tiles), 8), so ragged batches pad by at most
      tb-1 rows instead of padding to a multiple of a fixed large tile.
    """
    max_tile = max(8, _round_up(max_tile, 8))
    num_tiles = max(_cdiv(B, max_tile), 1)
    if B >= 16:
        num_tiles = max(num_tiles, 2)
    tb = _round_up(_cdiv(B, num_tiles), 8)
    b_pad = num_tiles * tb
    return tb, b_pad, num_tiles


# ---------------------------------------------------------------------------
# Wrapper
# ---------------------------------------------------------------------------
def actor_forward(x, padded_params, action_dim, *, block_b=1024):
    """x: (B, obs) float32. Returns (B, action_dim) float32."""
    w1, b1, w2, b2, w3, b3, high = padded_params
    B, obs = x.shape
    l1p = w1.shape[1]
    l2p = w2.shape[1]
    ap = w3.shape[1]

    tb, b_pad, num_tiles = _choose_batch_tiling(B, block_b)
    if b_pad != B:
        x = jnp.pad(x, ((0, b_pad - B), (0, 0)))
    # Cast input once in the wrapper: halves the per-tile x DMA and its
    # double-buffered VMEM footprint (rounding is identical to an in-kernel cast).
    x = x.astype(jnp.bfloat16)

    grid = (num_tiles,)
    resident = lambda i: (0, 0)   # weights/biases: same block every tile

    flops = 2 * b_pad * (obs * l1p + l1p * l2p + l2p * ap)
    bytes_accessed = int(
        b_pad * obs * 2                                      # x (bf16)
        + sum(a.size * a.dtype.itemsize for a in (w1, b1, w2, b2, w3, b3, high))
        + b_pad * ap * 2)                                    # out (bf16)

    out = pl.pallas_call(
        actor_kernel,
        out_shape=jax.ShapeDtypeStruct((b_pad, ap), jnp.bfloat16),
        grid=grid,
        in_specs=[
            pl.BlockSpec((tb, obs), lambda i: (i, 0)),   # x: streamed per tile
            pl.BlockSpec((obs, l1p), resident),          # W1 (bf16, resident)
            pl.BlockSpec((1, l1p), resident),            # b1
            pl.BlockSpec((l1p, l2p), resident),          # W2
            pl.BlockSpec((1, l2p), resident),            # b2
            pl.BlockSpec((l2p, ap), resident),           # W3
            pl.BlockSpec((1, ap), resident),             # b3
            pl.BlockSpec((1, ap), resident),             # action_high
        ],
        out_specs=pl.BlockSpec((tb, ap), lambda i: (i, 0)),
        compiler_params=pltpu.CompilerParams(
            dimension_semantics=("parallel",)),
        cost_estimate=pl.CostEstimate(
            flops=flops,
            transcendentals=b_pad * ap,
            bytes_accessed=bytes_accessed),
    )(x, w1, b1, w2, b2, w3, b3, high)

    return out[:B, :action_dim].astype(jnp.float32)


# ---------------------------------------------------------------------------
# Init (mirrors the PyTorch module's __init__ bounds) + f32 reference
# ---------------------------------------------------------------------------
def init_actor_params(key, obs_size, action_dim, l1_size=400, l2_size=300):
    """Deterministic init mirroring the PyTorch module's __init__ bounds.

    PyTorch stores Linear weights as (out, in); we store them transposed as
    (in, out). The init bounds follow the reference code literally:
    f = 1/sqrt(weight.size(0)) = 1/sqrt(out_features) for layers 1 and 2.
    """
    k1, k2, k3, k4, k5, k6 = jax.random.split(key, 6)
    f1 = 1.0 / np.sqrt(l1_size)
    f2 = 1.0 / np.sqrt(l2_size)
    f3 = 0.003
    w1 = jax.random.uniform(k1, (obs_size, l1_size), jnp.float32, -f1, f1)
    b1 = jax.random.uniform(k2, (l1_size,), jnp.float32, -f1, f1)
    w2 = jax.random.uniform(k3, (l1_size, l2_size), jnp.float32, -f2, f2)
    b2 = jax.random.uniform(k4, (l2_size,), jnp.float32, -f2, f2)
    w3 = jax.random.uniform(k5, (l2_size, action_dim), jnp.float32, -f3, f3)
    b3 = jax.random.uniform(k6, (action_dim,), jnp.float32, -f3, f3)
    return (w1, b1, w2, b2, w3, b3)


def actor_reference(x, params, action_high):
    w1, b1, w2, b2, w3, b3 = params
    h1 = jnp.maximum(x @ w1 + b1, 0.0)
    h2 = jnp.maximum(h1 @ w2 + b2, 0.0)
    return jnp.tanh(h2 @ w3 + b3) * action_high


# ---------------------------------------------------------------------------
# Test harness
# ---------------------------------------------------------------------------
if __name__ == "__main__":
    # Synthetic "action_space": 4-dim continuous actions with per-dim bounds.
    obs_size = 16
    action_dim = 4
    batch = 2
    action_high = jnp.asarray([2.0, 1.0, 0.5, 3.0], dtype=jnp.float32)

    key = jax.random.PRNGKey(0)
    kx, kp, kx2, kx3 = jax.random.split(key, 4)
    x = jax.random.normal(kx, (batch, obs_size), dtype=jnp.float32)
    params = init_actor_params(kp, obs_size, action_dim)
    padded_params, adim = prepare_actor_params(params, action_high)

    # bf16 matmul inputs / bf16 output with f32 accumulation -> loosened tol.
    rtol, atol = 5e-2, 5e-3

    # Primary small-shape run (single tile).
    out = actor_forward(x, padded_params, adim)
    out = jax.block_until_ready(out)
    ref = actor_reference(x, params, action_high)
    assert out.shape == (batch, action_dim)
    np.testing.assert_allclose(np.asarray(out), np.asarray(ref),
                               rtol=rtol, atol=atol)

    # Secondary run exercising the multi-tile batch grid + ragged-batch padding.
    x2 = jax.random.normal(kx2, (20, obs_size), dtype=jnp.float32)
    out2 = jax.block_until_ready(
        actor_forward(x2, padded_params, adim, block_b=8))
    ref2 = actor_reference(x2, params, action_high)
    assert out2.shape == (20, action_dim)
    np.testing.assert_allclose(np.asarray(out2), np.asarray(ref2),
                               rtol=rtol, atol=atol)

    # Third run: mid-size ragged batch with the default (large) tile cap;
    # exercises the >=2-tile split path (grid=(2,), tb=152 for B=300).
    x3 = jax.random.normal(kx3, (300, obs_size), dtype=jnp.float32)
    out3 = jax.block_until_ready(actor_forward(x3, padded_params, adim))
    ref3 = actor_reference(x3, params, action_high)
    assert out3.shape == (300, action_dim)
    np.testing.assert_allclose(np.asarray(out3), np.asarray(ref3),
                               rtol=rtol, atol=atol)

    # TODO(synk): take_action() (numpy conversion + noise + clip) is host-side
    # glue, not part of the TPU kernel.
    print("KERNEL_OK")
</pallas_src>

<mosaic_0001>
module attributes {stable_mosaic.version = 11 : i64} {
  func.func @actor_kernel(%arg0: i32, %arg1: memref<8x16xbf16, #tpu.memory_space<vmem>>, %arg2: memref<16x512xbf16, #tpu.memory_space<vmem>>, %arg3: memref<1x512xf32, #tpu.memory_space<vmem>>, %arg4: memref<512x384xbf16, #tpu.memory_space<vmem>>, %arg5: memref<1x384xf32, #tpu.memory_space<vmem>>, %arg6: memref<384x128xbf16, #tpu.memory_space<vmem>>, %arg7: memref<1x128xf32, #tpu.memory_space<vmem>>, %arg8: memref<1x128xf32, #tpu.memory_space<vmem>>, %arg9: memref<8x128xbf16, #tpu.memory_space<vmem>>) attributes {dimension_semantics = [#tpu.dimension_semantics<parallel>], iteration_bounds = array<i64: 1>, scalar_prefetch = 0 : i64, scratch_operands = 0 : i64, tpu.core_type = #tpu.core_type<tc>, window_params = [{transform_indices = @transform_0, window_bounds = array<i64: 8, 16>}, {pipeline_mode = #tpu.pipeline_mode<synchronous>, transform_indices = @transform_1, window_bounds = array<i64: 16, 512>}, {pipeline_mode = #tpu.pipeline_mode<synchronous>, transform_indices = @transform_2, window_bounds = array<i64: 1, 512>}, {pipeline_mode = #tpu.pipeline_mode<synchronous>, transform_indices = @transform_3, window_bounds = array<i64: 512, 384>}, {pipeline_mode = #tpu.pipeline_mode<synchronous>, transform_indices = @transform_4, window_bounds = array<i64: 1, 384>}, {pipeline_mode = #tpu.pipeline_mode<synchronous>, transform_indices = @transform_5, window_bounds = array<i64: 384, 128>}, {pipeline_mode = #tpu.pipeline_mode<synchronous>, transform_indices = @transform_6, window_bounds = array<i64: 1, 128>}, {pipeline_mode = #tpu.pipeline_mode<synchronous>, transform_indices = @transform_7, window_bounds = array<i64: 1, 128>}, {transform_indices = @transform_8, window_bounds = array<i64: 8, 128>}]} {
    %c0 = arith.constant 0 : index
    %c0_0 = arith.constant 0 : index
    %0 = vector.load %arg1[%c0, %c0_0] : memref<8x16xbf16, #tpu.memory_space<vmem>>, vector<8x16xbf16>
    %c0_1 = arith.constant 0 : index
    %c0_2 = arith.constant 0 : index
    %1 = vector.load %arg2[%c0_1, %c0_2] : memref<16x512xbf16, #tpu.memory_space<vmem>>, vector<16x512xbf16>
    %cst = arith.constant dense<0.000000e+00> : vector<8x512xf32>
    %2 = tpu.matmul %0, %1, %cst {dimension_numbers = #tpu.dot_dimension_numbers<[1], [0], [0], [1], [0, 0, 1, 1], [], []>} : vector<8x16xbf16>, vector<16x512xbf16>, vector<8x512xf32> -> vector<8x512xf32>
    %c0_3 = arith.constant 0 : index
    %c0_4 = arith.constant 0 : index
    %3 = vector.load %arg3[%c0_3, %c0_4] : memref<1x512xf32, #tpu.memory_space<vmem>>, vector<1x512xf32>
    %4 = vector.broadcast %3 : vector<1x512xf32> to vector<8x512xf32>
    %5 = arith.addf %2, %4 : vector<8x512xf32>
    %cst_5 = arith.constant 0.000000e+00 : f32
    %6 = vector.broadcast %cst_5 : f32 to vector<8x512xf32>
    %7 = arith.maximumf %5, %6 : vector<8x512xf32>
    %8 = arith.truncf %7 : vector<8x512xf32> to vector<8x512xbf16>
    %c0_6 = arith.constant 0 : index
    %c0_7 = arith.constant 0 : index
    %9 = vector.load %arg4[%c0_6, %c0_7] : memref<512x384xbf16, #tpu.memory_space<vmem>>, vector<512x384xbf16>
    %cst_8 = arith.constant dense<0.000000e+00> : vector<8x384xf32>
    %10 = tpu.matmul %8, %9, %cst_8 {dimension_numbers = #tpu.dot_dimension_numbers<[1], [0], [0], [1], [0, 0, 1, 1], [], []>} : vector<8x512xbf16>, vector<512x384xbf16>, vector<8x384xf32> -> vector<8x384xf32>
    %c0_9 = arith.constant 0 : index
    %c0_10 = arith.constant 0 : index
    %11 = vector.load %arg5[%c0_9, %c0_10] : memref<1x384xf32, #tpu.memory_space<vmem>>, vector<1x384xf32>
    %12 = vector.broadcast %11 : vector<1x384xf32> to vector<8x384xf32>
    %13 = arith.addf %10, %12 : vector<8x384xf32>
    %cst_11 = arith.constant 0.000000e+00 : f32
    %14 = vector.broadcast %cst_11 : f32 to vector<8x384xf32>
    %15 = arith.maximumf %13, %14 : vector<8x384xf32>
    %16 = arith.truncf %15 : vector<8x384xf32> to vector<8x384xbf16>
    %c0_12 = arith.constant 0 : index
    %c0_13 = arith.constant 0 : index
    %17 = vector.load %arg6[%c0_12, %c0_13] : memref<384x128xbf16, #tpu.memory_space<vmem>>, vector<384x128xbf16>
    %cst_14 = arith.constant dense<0.000000e+00> : vector<8x128xf32>
    %18 = tpu.matmul %16, %17, %cst_14 {dimension_numbers = #tpu.dot_dimension_numbers<[1], [0], [0], [1], [0, 0, 1, 1], [], []>} : vector<8x384xbf16>, vector<384x128xbf16>, vector<8x128xf32> -> vector<8x128xf32>
    %c0_15 = arith.constant 0 : index
    %c0_16 = arith.constant 0 : index
    %19 = vector.load %arg7[%c0_15, %c0_16] : memref<1x128xf32, #tpu.memory_space<vmem>>, vector<1x128xf32>
    %20 = vector.broadcast %19 : vector<1x128xf32> to vector<8x128xf32>
    %21 = arith.addf %18, %20 : vector<8x128xf32>
    %22 = math.tanh %21 : vector<8x128xf32>
    %c0_17 = arith.constant 0 : index
    %c0_18 = arith.constant 0 : index
    %23 = vector.load %arg8[%c0_17, %c0_18] : memref<1x128xf32, #tpu.memory_space<vmem>>, vector<1x128xf32>
    %24 = vector.broadcast %23 : vector<1x128xf32> to vector<8x128xf32>
    %25 = arith.mulf %22, %24 : vector<8x128xf32>
    %26 = arith.truncf %25 : vector<8x128xf32> to vector<8x128xbf16>
    %c0_19 = arith.constant 0 : index
    %c0_20 = arith.constant 0 : index
    %27 = vector.load %arg9[%c0_19, %c0_20] : memref<8x128xbf16, #tpu.memory_space<vmem>>, vector<8x128xbf16>
    tpu.vector_store %arg9[%c0_19, %c0_20], %26 {strides = array<i32>} : memref<8x128xbf16, #tpu.memory_space<vmem>>, vector<8x128xbf16>,
    return
  }
  func.func @transform_0(%arg0: i32) -> (i32, i32) {
    %c0_i32 = arith.constant 0 : i32
    %c0_i32_0 = arith.constant 0 : i32
    return %arg0, %c0_i32 : i32, i32
  }
  func.func @transform_1(%arg0: i32) -> (i32, i32) {
    %c0_i32 = arith.constant 0 : i32
    %c0_i32_0 = arith.constant 0 : i32
    %c0_i32_1 = arith.constant 0 : i32
    return %c0_i32, %c0_i32_0 : i32, i32
  }
  func.func @transform_2(%arg0: i32) -> (i32, i32) {
    %c0_i32 = arith.constant 0 : i32
    %c0_i32_0 = arith.constant 0 : i32
    %c0_i32_1 = arith.constant 0 : i32
    return %c0_i32, %c0_i32_0 : i32, i32
  }
  func.func @transform_3(%arg0: i32) -> (i32, i32) {
    %c0_i32 = arith.constant 0 : i32
    %c0_i32_0 = arith.constant 0 : i32
    %c0_i32_1 = arith.constant 0 : i32
    return %c0_i32, %c0_i32_0 : i32, i32
  }
  func.func @transform_4(%arg0: i32) -> (i32, i32) {
    %c0_i32 = arith.constant 0 : i32
    %c0_i32_0 = arith.constant 0 : i32
    %c0_i32_1 = arith.constant 0 : i32
    return %c0_i32, %c0_i32_0 : i32, i32
  }
  func.func @transform_5(%arg0: i32) -> (i32, i32) {
    %c0_i32 = arith.constant 0 : i32
    %c0_i32_0 = arith.constant 0 : i32
    %c0_i32_1 = arith.constant 0 : i32
    return %c0_i32, %c0_i32_0 : i32, i32
  }
  func.func @transform_6(%arg0: i32) -> (i32, i32) {
    %c0_i32 = arith.constant 0 : i32
    %c0_i32_0 = arith.constant 0 : i32
    %c0_i32_1 = arith.constant 0 : i32
    return %c0_i32, %c0_i32_0 : i32, i32
  }
  func.func @transform_7(%arg0: i32) -> (i32, i32) {
    %c0_i32 = arith.constant 0 : i32
    %c0_i32_0 = arith.constant 0 : i32
    %c0_i32_1 = arith.constant 0 : i32
    return %c0_i32, %c0_i32_0 : i32, i32
  }
  func.func @transform_8(%arg0: i32) -> (i32, i32) {
    %c0_i32 = arith.constant 0 : i32
    %c0_i32_0 = arith.constant 0 : i32
    return %arg0, %c0_i32 : i32, i32
  }
}

</mosaic_0001>

<bundles_post_ra>
// kernel: tpu_custom_call.1
= control target key start
LH: loop header
LB: loop body
LE: loop exit
PB: predicated region body
PF: predicated region fallthrough
CT: control target
= control target key end

     0   :  { %13 = vsyncpa [#allocation3], 0  ;;  %s2036_s0 = inlined_call_operand.hbm [shape: bf16[8,16], index: 0, kind: input, shape index: {}]   ;;  %s2037_s1 = inlined_call_operand.hbm [shape: bf16[16,512], index: 1, kind: input, shape index: {}]   ;;  %s2038_s2 = inlined_call_operand.vmem [shape: f32[1,512], index: 2, kind: input, shape index: {}]   ;;  %s2039_s3 = inlined_call_operand.hbm [shape: bf16[512,384], index: 3, kind: input, shape index: {}]   ;;  %s2040_s4 = inlined_call_operand.vmem [shape: f32[1,384], index: 4, kind: input, shape index: {}]   ;;  %s2041_s5 = inlined_call_operand.hbm [shape: bf16[384,128], index: 5, kind: input, shape index: {}]   ;;  %s2042_s6 = inlined_call_operand.vmem [shape: f32[1,128], index: 6, kind: input, shape index: {}]   ;;  %s2043_s7 = inlined_call_operand.vmem [shape: f32[1,128], index: 7, kind: input, shape index: {}]   ;;  %s2044_s8 = inlined_call_operand.hbm [shape: bf16[8,128], index: 8, kind: output, shape index: {}]  }
   0x1   :  { %14 = vsyncpa [#allocation6], 0 }
   0x2   :  { %15 = vsyncpa [#allocation9], 0 }
   0x3   :  { %16 = vsyncpa [#allocation4], 0  ;;  %s1878_s27 = smov [#allocation5]   ;;  %s1760_s9 = scalar_lea.hbm %s2037_s1, 512 }
   0x4   :  { %s32_s28 = sshll.u32 %s1878_s27, 4  ;;  %p1761_p0 = scmp.ne.s32.totalorder %s2037_s1, %s1760_s9  ;;  %s33_s28 = int_to_ptr.vmem [resolvable:$true] %s32_s28 }
   0x5   :  { %p1764_p1 = scmp.lt.u32.totalorder %s1760_s9, %s2037_s1 }
   0x7   :  { %p1766_p2 = pnand %p1764_p1, %p1761_p0 }
   0x9   :  { %1769 = shalt.err (!%p1766_p2)
}
   0xa   :  { %s1770_s14 = scalar_lea.vmem %s33_s28, 512  ;;  %p1775_p4 = scmp.lt.s32.totalorder %s33_s28, %s33_s28 }
   0xb   :  { %p1771_p3 = scmp.ne.s32.totalorder %s33_s28, %s1770_s14  ;;  %p1776_p5 = scmp.lt.s32.totalorder %s1770_s14, %s1770_s14 }
   0xd   :  { %p1777_p6 = por %p1776_p5, %p1775_p4 }
   0xf   :  { %p1778_p7 = pnand %p1777_p6, %p1771_p3 }
  0x11   :  { %1781 = shalt.err (!%p1778_p7)
}
  0x12   :  { %s1879_s15 = smov 256   ;;  %s1880_s16 = smov 16  }
  0x13   :  { %38 = dma.hbm_to_vmem [thread:$0]  %s2037_s1, 512, %s33_s28, [#allocation6], %s1879_s15, %s1879_s15, %s1880_s16  }
  0x14   :  { %s1881_s19 = smov [#allocation2]   ;;  %s1882_s21 = smov [#allocation7]  }
  0x15   :  { %s23_s20 = sshll.u32 %s1881_s19, 4  ;;  %s46_s22 = sshll.u32 %s1882_s21, 4  ;;  %s24_s20 = int_to_ptr.vmem [resolvable:$true] %s23_s20  ;;  %s47_s22 = int_to_ptr.vmem [resolvable:$true] %s46_s22 }
  0x16   :  { %s1782_s25 = scalar_lea.hbm %s2036_s0, 64 }
  0x17   :  { %p1783_p8 = scmp.ne.s32.totalorder %s2036_s0, %s1782_s25  ;;  %p1786_p9 = scmp.lt.u32.totalorder %s1782_s25, %s2036_s0 }
  0x19   :  { %p1788_p10 = pnand %p1786_p9, %p1783_p8 }
  0x1b   :  { %1791 = shalt.err (!%p1788_p10)
}
  0x1c   :  { %s1792_s1 = scalar_lea.vmem %s24_s20, 64  ;;  %p1797_p12 = scmp.lt.s32.totalorder %s24_s20, %s24_s20 }
  0x1d   :  { %p1793_p11 = scmp.ne.s32.totalorder %s24_s20, %s1792_s1  ;;  %p1798_p13 = scmp.lt.s32.totalorder %s1792_s1, %s1792_s1 }
  0x1f   :  { %p1799_p0 = por %p1798_p13, %p1797_p12 }
  0x21   :  { %p1800_p1 = pnand %p1799_p0, %p1793_p11 }
  0x23   :  { %1803 = shalt.err (!%p1800_p1)
}
  0x24   :  { %26 = dma.hbm_to_vmem [thread:$0]  %s2036_s0, 64, %s24_s20, [#allocation3]  }
  0x25   :  { %s1804_s12 = scalar_lea.hbm %s2039_s3, 12288 }
  0x26   :  { %p1805_p2 = scmp.ne.s32.totalorder %s2039_s3, %s1804_s12  ;;  %p1808_p3 = scmp.lt.u32.totalorder %s1804_s12, %s2039_s3 }
  0x28   :  { %p1810_p4 = pnand %p1808_p3, %p1805_p2 }
  0x2a   :  { %1813 = shalt.err (!%p1810_p4)
}
  0x2b   :  { %s1814_s17 = scalar_lea.vmem %s47_s22, 12288  ;;  %p1819_p6 = scmp.lt.s32.totalorder %s47_s22, %s47_s22 }
  0x2c   :  { %p1815_p5 = scmp.ne.s32.totalorder %s47_s22, %s1814_s17  ;;  %p1820_p7 = scmp.lt.s32.totalorder %s1814_s17, %s1814_s17 }
  0x2e   :  { %p1821_p8 = por %p1820_p7, %p1819_p6 }
  0x30   :  { %p1822_p9 = pnand %p1821_p8, %p1815_p5 }
  0x32   :  { %1825 = shalt.err (!%p1822_p9)
}
  0x33   :  { %s1883_s0 = smov 192   ;;  %s1884_s18 = smov 12  }
  0x34   :  { %52 = dma.hbm_to_vmem [thread:$0]  %s2039_s3, 12288, %s47_s22, [#allocation6], %s1883_s0, %s1883_s0, %s1884_s18  }
  0x35   :  { %s1885_s21 = smov [#allocation8]   ;;  %s1826_s26 = scalar_lea.hbm %s2041_s5, 3072 }
  0x36   :  { %s60_s23 = sshll.u32 %s1885_s21, 4  ;;  %p1827_p10 = scmp.ne.s32.totalorder %s2041_s5, %s1826_s26  ;;  %s61_s23 = int_to_ptr.vmem [resolvable:$true] %s60_s23 }
  0x37   :  { %p1830_p11 = scmp.lt.u32.totalorder %s1826_s26, %s2041_s5 }
  0x39   :  { %p1832_p12 = pnand %p1830_p11, %p1827_p10 }
  0x3b   :  { %1835 = shalt.err (!%p1832_p12)
}
  0x3c   :  { %s1836_s28 = scalar_lea.vmem %s61_s23, 3072  ;;  %p1841_p0 = scmp.lt.s32.totalorder %s61_s23, %s61_s23 }
  0x3d   :  { %p1837_p13 = scmp.ne.s32.totalorder %s61_s23, %s1836_s28  ;;  %p1842_p1 = scmp.lt.s32.totalorder %s1836_s28, %s1836_s28 }
  0x3f   :  { %p1843_p2 = por %p1842_p1, %p1841_p0 }
  0x41   :  { %p1844_p3 = pnand %p1843_p2, %p1837_p13 }
  0x43   :  { %1847 = shalt.err (!%p1844_p3)
}
  0x44   :  { %s1886_s3 = smov 64   ;;  %s1887_s22 = smov 4  }
  0x45   :  { %66 = dma.hbm_to_vmem [thread:$0]  %s2041_s5, 3072, %s61_s23, [#allocation9], %s1886_s3, %s1886_s3, %s1887_s22  }
  0x46   :  { %1870 = dma.done.wait [#allocation3], 64  }
  0x47   :  { %1871 = vsyncadd [#allocation3], 4294967232 }
  0x48   :  { %1872 = dma.done.wait [#allocation6], 12800  }
  0x49   :  { %1873 = vsyncadd [#allocation6], 4294954496 }
  0x4a   :  { %1874 = dma.done.wait [#allocation9], 3072  }
  0x4b   :  { %1875 = vsyncadd [#allocation9], 4294964224  ;;  %v1888_v0 = vmov 0   ;;  %v1600_v1 = vld [vmem:[#allocation5 + $0x4] ss:$16 sps:$4 sm:$0xff]   ;;  %vm131_vm0 = vcmask 130048   ;;  %v91_v56 = vlaneseq }
  0x4c   :  { %167 = vmatprep.mubr.bf16.mxu0 %v1888_v0  ;;  %208 = vmatprep.mubr.bf16.mxu1 %v1888_v0  ;;  %v1602_v2 = vld [vmem:[#allocation5] ss:$16 sps:$4 sm:$0xff]   ;;  %v84_v3 = vld [vmem:[#allocation2] sm:$0xf]  ;;  %v1605_v5 = vld [vmem:[#allocation5 + $0x8] ss:$16 sps:$4 sm:$0xff]  }
  0x4d   :  { %135 = vmatprep.subr.bf16.mxu0 %v1600_v1  ;;  %v1603_v4 = vld [vmem:[#allocation5 + $0xc] ss:$16 sps:$4 sm:$0xff]   ;;  %v1608_v7 = vld [vmem:[#allocation7 + $0x4] ss:$12 sps:$4 sm:$0xff]   ;;  %v1614_v10 = vld [vmem:[#allocation7 + $0x34] ss:$12 sps:$4 sm:$0xff]  }
  0x4e   :  { %136 = vmatpush1.bf16.msra.mxu0 %v1602_v2  ;;  %v1606_v6 = vld [vmem:[#allocation7] ss:$12 sps:$4 sm:$0xff]   ;;  %176 = vmatprep.subr.bf16.mxu1 %v1603_v4  ;;  %v1611_v8 = vld [vmem:[#allocation7 + $0x1c] ss:$12 sps:$4 sm:$0xff]   ;;  %v1609_v9 = vld [vmem:[#allocation7 + $0x18] ss:$12 sps:$4 sm:$0xff]  }
  0x4f   :  { %177 = vmatpush1.bf16.msra.mxu1 %v1605_v5  ;;  %882 = vmatprep.subr.bf16.mxu0 %v1608_v7  ;;  %v1612_v11 = vld [vmem:[#allocation7 + $0x30] ss:$12 sps:$4 sm:$0xff]   ;;  %v1617_v12 = vld [vmem:[#allocation7 + $0x4c] ss:$12 sps:$4 sm:$0xff]   ;;  %v1615_v13 = vld [vmem:[#allocation7 + $0x48] ss:$12 sps:$4 sm:$0xff]  }
  0x50   :  { %v1620_v14 = vld [vmem:[#allocation7 + $0x64] ss:$12 sps:$4 sm:$0xff]   ;;  %v1633_v15 = vld [vmem:[#allocation7 + $0xc8] ss:$12 sps:$4 sm:$0xff]   ;;  %v1618_v17 = vld [vmem:[#allocation7 + $0x60] ss:$12 sps:$4 sm:$0xff]  }
  0x51   :  { %1361 = vmatmul.mubr.msk.bf16.vlgmr.msra.gmra.mrb[0].mxu0 %vm131_vm0, %v84_v3  ;;  %v1634_v16 = vld [vmem:[#allocation7 + $0x8] ss:$12 sps:$4 sm:$0xff]   ;;  %1485 = vmatprep.subr.bf16.mxu1 %v1633_v15  ;;  %v1638_v19 = vld [vmem:[#allocation7 + $0xe0] ss:$12 sps:$4 sm:$0xff]   ;;  %v1621_v21 = vld [vmem:[#allocation7 + $0x78] ss:$12 sps:$4 sm:$0xff]  }
  0x52   :  { %883 = vmatpush1.bf16.msra.mxu0 %v1606_v6  ;;  %1362 = vmatmul.mubr.msk.bf16.vlgmr.msra.gmra.mrb[0].mxu1 %vm131_vm0, %v84_v3  ;;  %v1623_v18 = vld [vmem:[#allocation7 + $0x7c] ss:$12 sps:$4 sm:$0xff]   ;;  %v1639_v20 = vld [vmem:[#allocation7 + $0x20] ss:$12 sps:$4 sm:$0xff]   ;;  %v1643_v22 = vld [vmem:[#allocation7 + $0xf8] ss:$12 sps:$4 sm:$0xff]  }
  0x53   :  { %884 = vmatprep.subr.bf16.mxu0 %v1611_v8  ;;  %1486 = vmatpush3.bf16.msra.mxu1 %v1634_v16  ;;  %v1644_v23 = vld [vmem:[#allocation7 + $0x38] ss:$12 sps:$4 sm:$0xff]   ;;  %v1626_v24 = vld [vmem:[#allocation7 + $0x94] ss:$12 sps:$4 sm:$0xff]   ;;  %v1648_v25 = vld [vmem:[#allocation7 + $0x110] ss:$12 sps:$4 sm:$0xff]  }
  0x54   :  { %1487 = vmatprep.subr.bf16.mxu1 %v1638_v19  ;;  %v1649_v26 = vld [vmem:[#allocation7 + $0x50] ss:$12 sps:$4 sm:$0xff]   ;;  %v1629_v28 = vld [vmem:[#allocation7 + $0xac] ss:$12 sps:$4 sm:$0xff]   ;;  %v1653_v29 = vld [vmem:[#allocation7 + $0x128] ss:$12 sps:$4 sm:$0xff]  }
  0x55   :  { %v1624_v27 = vld [vmem:[#allocation7 + $0x90] ss:$12 sps:$4 sm:$0xff]   ;;  %v1654_v30 = vld [vmem:[#allocation7 + $0x68] ss:$12 sps:$4 sm:$0xff]   ;;  %v1658_v33 = vld [vmem:[#allocation7 + $0x140] ss:$12 sps:$4 sm:$0xff]  }
  0x56   :  { %885 = vmatpush1.bf16.msra.mxu0 %v1609_v9  ;;  %v1627_v31 = vld [vmem:[#allocation7 + $0xa8] ss:$12 sps:$4 sm:$0xff]   ;;  %v1632_v32 = vld [vmem:[#allocation7 + $0xc4] ss:$12 sps:$4 sm:$0xff]   ;;  %v1630_v34 = vld [vmem:[#allocation7 + $0xc0] ss:$12 sps:$4 sm:$0xff]  }
  0x57   :  { %886 = vmatprep.subr.bf16.mxu0 %v1614_v10  ;;  %1488 = vmatpush3.bf16.msra.mxu1 %v1639_v20  ;;  %v1659_v35 = vld [vmem:[#allocation7 + $0x80] ss:$12 sps:$4 sm:$0xff]   ;;  %v1637_v36 = vld [vmem:[#allocation7 + $0xdc] ss:$12 sps:$4 sm:$0xff]   ;;  %v1635_v37 = vld [vmem:[#allocation7 + $0xd8] ss:$12 sps:$4 sm:$0xff]  }
  0x58   :  { %1489 = vmatprep.subr.bf16.mxu1 %v1643_v22  ;;  %v1642_v38 = vld [vmem:[#allocation7 + $0xf4] ss:$12 sps:$4 sm:$0xff]   ;;  %v1640_v39 = vld [vmem:[#allocation7 + $0xf0] ss:$12 sps:$4 sm:$0xff]   ;;  %v1647_v40 = vld [vmem:[#allocation7 + $0x10c] ss:$12 sps:$4 sm:$0xff]  }
  0x59   :  { %v1645_v41 = vld [vmem:[#allocation7 + $0x108] ss:$12 sps:$4 sm:$0xff]   ;;  %v1652_v42 = vld [vmem:[#allocation7 + $0x124] ss:$12 sps:$4 sm:$0xff]   ;;  %v1650_v43 = vld [vmem:[#allocation7 + $0x120] ss:$12 sps:$4 sm:$0xff]  }
  0x5a   :  { %887 = vmatpush1.bf16.msra.mxu0 %v1612_v11  ;;  %v1657_v44 = vld [vmem:[#allocation7 + $0x13c] ss:$12 sps:$4 sm:$0xff]   ;;  %v1655_v45 = vld [vmem:[#allocation7 + $0x138] ss:$12 sps:$4 sm:$0xff]   ;;  %v1662_v46 = vld [vmem:[#allocation7 + $0x154] ss:$12 sps:$4 sm:$0xff]  }
  0x5b   :  { %888 = vmatprep.subr.bf16.mxu0 %v1617_v12  ;;  %1490 = vmatpush3.bf16.msra.mxu1 %v1644_v23  ;;  %v1663_v47 = vld [vmem:[#allocation7 + $0x158] ss:$12 sps:$4 sm:$0xff]   ;;  %v1660_v48 = vld [vmem:[#allocation7 + $0x150] ss:$12 sps:$4 sm:$0xff]   ;;  %v1665_v52 = vld [vmem:[#allocation7 + $0x168] ss:$12 sps:$4 sm:$0xff]  }
  0x5c   :  { %1491 = vmatprep.subr.bf16.mxu1 %v1648_v25  ;;  %v1664_v49 = vld [vmem:[#allocation7 + $0x98] ss:$12 sps:$4 sm:$0xff]   ;;  %v1668_v51 = vld [vmem:[#allocation7 + $0x170] ss:$12 sps:$4 sm:$0xff]   ;;  %v1673_v55 = vld [vmem:[#allocation7 + $0x248] ss:$12 sps:$4 sm:$0xff]  }
  0x5d   :  { %v1667_v50 = vld [vmem:[#allocation7 + $0x16c] ss:$12 sps:$4 sm:$0xff]   ;;  %v1669_v53 = vld [vmem:[#allocation7 + $0xb0] ss:$12 sps:$4 sm:$0xff]   ;;  %v1985_v57 = vshrl.u32 %v91_v56, 7  ;;  %vm1890_vm1 = vmmov 0  }
  0x5e   :  { %889 = vmatpush1.bf16.msra.mxu0 %v1615_v13  ;;  %v1672_v54 = vld [vmem:[#allocation7 + $0x184] ss:$12 sps:$4 sm:$0xff]   ;;  %v1991_v59 = vld [vmem:[%s2038_s2] sm:$0xf]  ;;  %v1670_v15 = vld [vmem:[#allocation7 + $0x180] ss:$12 sps:$4 sm:$0xff]  }
  0x5f   :  { %890 = vmatprep.subr.bf16.mxu0 %v1620_v14  ;;  %1492 = vmatpush3.bf16.msra.mxu1 %v1649_v26  ;;  %v93_v58 = vsub.s32 0, %v1985_v57  ;;  %v97_v60 = vsub.s32 1, %v1985_v57  ;;  %v105_v61 = vsub.s32 3, %v1985_v57  ;;  %v1674_v16 = vld [vmem:[#allocation7 + $0x188] ss:$12 sps:$4 sm:$0xff]   ;;  %s1891_s16 = smov [#allocation10]  }
  0x60   :  { %1493 = vmatprep.subr.bf16.mxu1 %v1653_v29  ;;  %v1677_v19 = vld [vmem:[#allocation7 + $0x19c] ss:$12 sps:$4 sm:$0xff]   ;;  %v1678_v20 = vld [vmem:[#allocation7 + $0x260] ss:$12 sps:$4 sm:$0xff]   ;;  %v1675_v22 = vld [vmem:[#allocation7 + $0x198] ss:$12 sps:$4 sm:$0xff]  }
  0x61   :  { %v94_v62 = vrot.slane %v1991_v59, %v93_v58  ;;  %v98_v63 = vrot.slane %v1991_v59, %v97_v60  ;;  %v106_v1 = vrot.slane %v1991_v59, %v105_v61  ;;  %v1679_v23 = vld [vmem:[#allocation7 + $0x1a0] ss:$12 sps:$4 sm:$0xff]   ;;  %v1683_v25 = vld [vmem:[#allocation7 + $0x278] ss:$12 sps:$4 sm:$0xff]   ;;  %v1680_v26 = vld [vmem:[#allocation7 + $0x1b0] ss:$12 sps:$4 sm:$0xff]  }
  0x62   :  { %891 = vmatpush1.bf16.msra.mxu0 %v1618_v17  ;;  %v1688_v29 = vld [vmem:[#allocation7 + $0x290] ss:$12 sps:$4 sm:$0xff]   ;;  %v1713_v56 = vld [vmem:[#allocation7 + $0x258] ss:$12 sps:$4 sm:$0xff]   ;;  %s1346_s17 = sshll.u32 %s1891_s16, 4  ;;  %s1347_s17 = int_to_ptr.vmem [resolvable:$true] %s1346_s17 }
  0x63   :  { %892 = vmatprep.subr.bf16.mxu0 %v1623_v18  ;;  %1494 = vmatpush3.bf16.msra.mxu1 %v1654_v30  ;;  %v1685_v30 = vld [vmem:[#allocation7 + $0x1c8] ss:$12 sps:$4 sm:$0xff]   ;;  %v1716_v61 = vld [vmem:[#allocation7 + $0x270] ss:$12 sps:$4 sm:$0xff]   ;;  %s1848_s0 = scalar_lea.vmem %s1347_s17, 64  ;;  %p1853_p5 = scmp.lt.s32.totalorder %s1347_s17, %s1347_s17 }
  0x64   :  { %1495 = vmatprep.subr.bf16.mxu1 %v1658_v33  ;;  %v1693_v33 = vld [vmem:[#allocation7 + $0x2a8] ss:$12 sps:$4 sm:$0xff]   ;;  %p1849_p4 = scmp.ne.s32.totalorder %s1347_s17, %s1848_s0  ;;  %p1854_p6 = scmp.lt.s32.totalorder %s1848_s0, %s1848_s0 }
  0x66   :  { %893 = vmatpush1.bf16.msra.mxu0 %v1621_v21  ;;  %p1855_p7 = por %p1854_p6, %p1853_p5 }
  0x67   :  { %894 = vmatprep.subr.bf16.mxu0 %v1626_v24  ;;  %1496 = vmatpush3.bf16.msra.mxu1 %v1659_v35  ;;  %v1682_v24 = vld [vmem:[#allocation7 + $0x1b4] ss:$12 sps:$4 sm:$0xff]  }
  0x68   :  { %1497 = vmatprep.subr.bf16.mxu1 %v1663_v47  ;;  %v1690_v35 = vld [vmem:[#allocation7 + $0x1e0] ss:$12 sps:$4 sm:$0xff]   ;;  %p1856_p8 = pnand %p1855_p7, %p1849_p4 }
  0x69   :  { %v1707_v47 = vld [vmem:[#allocation7 + $0x22c] ss:$12 sps:$4 sm:$0xff]  }
  0x6a   :  { %895 = vmatpush1.bf16.msra.mxu0 %v1624_v27  ;;  %v1684_v27 = vld [vmem:[#allocation7 + $0x1b8] ss:$12 sps:$4 sm:$0xff]  }
  0x6b   :  { %896 = vmatprep.subr.bf16.mxu0 %v1629_v28  ;;  %1498 = vmatpush3.bf16.msra.mxu1 %v1664_v49  ;;  %v1687_v28 = vld [vmem:[#allocation7 + $0x1cc] ss:$12 sps:$4 sm:$0xff]  }
  0x6c   :  { %1499 = vmatprep.subr.bf16.mxu1 %v1668_v51  ;;  %v1709_v51 = vld [vmem:[#allocation7 + $0x230] ss:$12 sps:$4 sm:$0xff]  }
  0x6e   :  { %897 = vmatpush1.bf16.msra.mxu0 %v1627_v31  ;;  %v1689_v31 = vld [vmem:[#allocation7 + $0x1d0] ss:$12 sps:$4 sm:$0xff]  }
  0x6f   :  { %898 = vmatprep.subr.bf16.mxu0 %v1632_v32  ;;  %1500 = vmatpush3.bf16.msra.mxu1 %v1669_v53  ;;  %v1692_v32 = vld [vmem:[#allocation7 + $0x1e4] ss:$12 sps:$4 sm:$0xff]  }
  0x70   :  { %1507 = vmatprep.subr.bf16.mxu1 %v1673_v55  ;;  %v1715_v55 = vld [vmem:[#allocation7 + $0x25c] ss:$12 sps:$4 sm:$0xff]  }
  0x72   :  { %899 = vmatpush1.bf16.msra.mxu0 %v1630_v34  ;;  %v101_v34 = vsub.s32 2, %v1985_v57  ;;  %v1752_v57 = vld [vmem:[#allocation8 + $0x90] sm:$0xff]  }
  0x73   :  { %900 = vmatprep.subr.bf16.mxu0 %v1637_v36  ;;  %v1694_v36 = vld [vmem:[#allocation7 + $0x1e8] ss:$12 sps:$4 sm:$0xff]  }
  0x76   :  { %901 = vmatpush1.bf16.msra.mxu0 %v1635_v37  ;;  %v1697_v37 = vld [vmem:[#allocation7 + $0x1fc] ss:$12 sps:$4 sm:$0xff]  }
  0x77   :  { %902 = vmatprep.subr.bf16.mxu0 %v1642_v38  ;;  %v1698_v38 = vld [vmem:[#allocation7 + $0x2c0] ss:$12 sps:$4 sm:$0xff]  }
  0x7a   :  { %903 = vmatpush1.bf16.msra.mxu0 %v1640_v39  ;;  %v102_v39 = vrot.slane %v1991_v59, %v101_v34  ;;  %v1718_v59 = vld [vmem:[#allocation7 + $0x274] ss:$12 sps:$4 sm:$0xff]  }
  0x7b   :  { %904 = vmatprep.subr.bf16.mxu0 %v1647_v40  ;;  %v1695_v40 = vld [vmem:[#allocation7 + $0x1f8] ss:$12 sps:$4 sm:$0xff]  }
  0x7e   :  { %905 = vmatpush1.bf16.msra.mxu0 %v1645_v41  ;;  %v1699_v41 = vld [vmem:[#allocation7 + $0x200] ss:$12 sps:$4 sm:$0xff]  }
  0x7f   :  { %906 = vmatprep.subr.bf16.mxu0 %v1652_v42  ;;  %v1702_v42 = vld [vmem:[#allocation7 + $0x214] ss:$12 sps:$4 sm:$0xff]  }
  0x82   :  { %907 = vmatpush1.bf16.msra.mxu0 %v1650_v43  ;;  %v1703_v43 = vld [vmem:[#allocation7 + $0x2d8] ss:$12 sps:$4 sm:$0xff]  }
  0x83   :  { %908 = vmatprep.subr.bf16.mxu0 %v1657_v44 }
  0x86   :  { %909 = vmatpush1.bf16.msra.mxu0 %v1655_v45  ;;  %v1700_v45 = vld [vmem:[#allocation7 + $0x210] ss:$12 sps:$4 sm:$0xff]  }
  0x87   :  { %910 = vmatprep.subr.bf16.mxu0 %v1662_v46  ;;  %v1704_v46 = vld [vmem:[#allocation7 + $0x218] ss:$12 sps:$4 sm:$0xff]  }
  0x8a   :  { %911 = vmatpush1.bf16.msra.mxu0 %v1660_v48  ;;  %v1708_v48 = vld [vmem:[#allocation7 + $0x2f0] ss:$12 sps:$4 sm:$0xff]  }
  0x8b   :  { %912 = vmatprep.subr.bf16.mxu0 %v1667_v50  ;;  %v1705_v50 = vld [vmem:[#allocation7 + $0x228] ss:$12 sps:$4 sm:$0xff]  }
  0x8e   :  { %913 = vmatpush1.bf16.msra.mxu0 %v1665_v52  ;;  %v1712_v52 = vld [vmem:[#allocation7 + $0x244] ss:$12 sps:$4 sm:$0xff]  }
  0x8f   :  { %923 = vmatprep.subr.bf16.mxu0 %v1672_v54  ;;  %v1710_v54 = vld [vmem:[#allocation7 + $0x240] ss:$12 sps:$4 sm:$0xff]  }
 0x124   :  { %v169_v0 = vpop.f32.mrb[0].mxu0 }
 0x125   :  { %v170_v2 = vadd.f32 %v169_v0, %v94_v62  ;;  %v171_v3 = vpop.f32.mrb[1].mxu0  ;;  %v2002_v6 = vpop.f32.mrb[0].mxu1  ;;  %v1721_v62 = vld [vmem:[#allocation7 + $0x28c] ss:$12 sps:$4 sm:$0xff]   ;;  %v1724_v0 = vld [vmem:[#allocation7 + $0x2a4] ss:$12 sps:$4 sm:$0xff]  }
 0x126   :  { %v172_v4 = vadd.f32 %v171_v3, %v98_v63  ;;  %v173_v5 = vpop.f32.mrb[2].mxu0  ;;  %v212_v9 = vpop.f32.mrb[1].mxu1  ;;  %v211_v44 = vadd.f32 %v2002_v6, %v102_v39  ;;  %v1719_v63 = vld [vmem:[#allocation7 + $0x288] ss:$12 sps:$4 sm:$0xff]   ;;  %v1725_v3 = vld [vmem:[#allocation7 + $0x2b8] ss:$12 sps:$4 sm:$0xff]  }
 0x127   :  { %v217_v7 = vmax.f32 %v170_v2, 0.0  ;;  %v174_v8 = vpop.f32.mrb[3].mxu0  ;;  %v213_v11 = vadd.f32 %v212_v9, %v106_v1  ;;  %v214_v12 = vpop.f32.mrb[2].mxu1  ;;  %v1722_v1 = vld [vmem:[#allocation7 + $0x2a0] ss:$12 sps:$4 sm:$0xff]  }
 0x128   :  { %v218_v10 = vmax.f32 %v172_v4, 0.0  ;;  %v215_v13 = vpop.f32.mrb[3].mxu1  ;;  %v219_v49 = vmax.f32 %v211_v44, 0.0  ;;  %v1727_v2 = vld [vmem:[#allocation7 + $0x2bc] ss:$12 sps:$4 sm:$0xff]   ;;  %v1734_v8 = vld [vmem:[#allocation8 + $0x40] sm:$0xff]  }
 0x129   :  { %v220_v17 = vmax.f32 %v213_v11, 0.0  ;;  %v221_v18 = vpack.c.bf16 %v217_v7, %v217_v7  ;;  %v1730_v4 = vld [vmem:[#allocation7 + $0x2d4] ss:$12 sps:$4 sm:$0xff]   ;;  %v1728_v5 = vld [vmem:[#allocation7 + $0x2d0] ss:$12 sps:$4 sm:$0xff]   ;;  %v1737_v11 = vld [vmem:[#allocation8 + $0x8] sm:$0xff]  }
 0x12a   :  { %v222_v14 = vpack.c.bf16 %v218_v10, %v218_v10  ;;  %v223_v53 = vpack.c.bf16 %v219_v49, %v219_v49  ;;  %v1733_v6 = vld [vmem:[#allocation7 + $0x2ec] ss:$12 sps:$4 sm:$0xff]   ;;  %v1731_v7 = vld [vmem:[#allocation7 + $0x2e8] ss:$12 sps:$4 sm:$0xff]   ;;  %v1735_v9 = vld [vmem:[#allocation8] sm:$0xff]  }
 0x12b   :  { %v224_v21 = vpack.c.bf16 %v220_v17, %v220_v17  ;;  %v1736_v10 = vld [vmem:[#allocation8 + $0x48] sm:$0xff]   ;;  %v1738_v12 = vld [vmem:[#allocation8 + $0x50] sm:$0xff]   ;;  %v1743_v17 = vld [vmem:[#allocation8 + $0x20] sm:$0xff]  }
 0x12c   :  { %914 = vmatprep.mubr.bf16.mxu0 %v222_v14  ;;  %996 = vmatprep.mubr.bf16.mxu1 %v222_v14  ;;  %v1739_v13 = vld [vmem:[#allocation8 + $0x10] sm:$0xff]   ;;  %v1740_v14 = vld [vmem:[#allocation8 + $0x58] sm:$0xff]  }
 0x12d   :  { %915 = vmatmul.mubr.bf16.vlgmr.msra.gmra.mrb[4].mxu0 %v221_v18  ;;  %997 = vmatmul.mubr.bf16.vlgmr.msra.gmra.mrb[4].mxu1 %v221_v18  ;;  %v1744_v18 = vld [vmem:[#allocation8 + $0x68] sm:$0xff]  }
 0x12e   :  { %924 = vmatpush1.bf16.msra.mxu0 %v1670_v15  ;;  %1508 = vmatpush3.bf16.msra.mxu1 %v1674_v16  ;;  %v1741_v15 = vld [vmem:[#allocation8 + $0x18] sm:$0xff]   ;;  %v1742_v16 = vld [vmem:[#allocation8 + $0x60] sm:$0xff]  }
 0x12f   :  { %925 = vmatprep.subr.bf16.mxu0 %v1677_v19  ;;  %1509 = vmatprep.subr.bf16.mxu1 %v1678_v20  ;;  %v1745_v19 = vld [vmem:[#allocation8 + $0x28] sm:$0xff]   ;;  %v1746_v20 = vld [vmem:[#allocation8 + $0x70] sm:$0xff]  }
 0x130   :  { %1036 = vmatprep.mubr.bf16.mxu1 %v224_v21  ;;  %955 = vmatprep.mubr.bf16.mxu0 %v224_v21  ;;  %v1747_v21 = vld [vmem:[#allocation8 + $0x30] sm:$0xff]  }
 0x132   :  { %926 = vmatpush1.bf16.msra.mxu0 %v1675_v22  ;;  %1510 = vmatpush3.bf16.msra.mxu1 %v1679_v23  ;;  %v1748_v22 = vld [vmem:[#allocation8 + $0x78] sm:$0xff]  }
 0x133   :  { %927 = vmatprep.subr.bf16.mxu0 %v1682_v24  ;;  %1511 = vmatprep.subr.bf16.mxu1 %v1683_v25  ;;  %v1749_v23 = vld [vmem:[#allocation8 + $0x38] sm:$0xff]   ;;  %v1889_v24 = vmov 0.0  }
 0x136   :  { %928 = vmatpush1.bf16.msra.mxu0 %v1680_v26  ;;  %1512 = vmatpush3.bf16.msra.mxu1 %v1684_v27 }
 0x137   :  { %929 = vmatprep.subr.bf16.mxu0 %v1687_v28  ;;  %1513 = vmatprep.subr.bf16.mxu1 %v1688_v29 }
 0x13a   :  { %930 = vmatpush1.bf16.msra.mxu0 %v1685_v30  ;;  %1514 = vmatpush3.bf16.msra.mxu1 %v1689_v31  ;;  %v353_v30 = vld [vmem:[%s2040_s4] sm:$0x7] }
 0x13b   :  { %931 = vmatprep.subr.bf16.mxu0 %v1692_v32  ;;  %1515 = vmatprep.subr.bf16.mxu1 %v1693_v33  ;;  %v366_v31 = vrot.slane %v353_v30, %v101_v34 }
 0x13e   :  { %932 = vmatpush1.bf16.msra.mxu0 %v1690_v35  ;;  %1516 = vmatpush3.bf16.msra.mxu1 %v1694_v36 }
 0x13f   :  { %933 = vmatprep.subr.bf16.mxu0 %v1697_v37  ;;  %1517 = vmatprep.subr.bf16.mxu1 %v1698_v38 }
 0x142   :  { %934 = vmatpush1.bf16.msra.mxu0 %v1695_v40  ;;  %1518 = vmatpush3.bf16.msra.mxu1 %v1699_v41  ;;  %v358_v40 = vrot.slane %v353_v30, %v93_v58  ;;  %v362_v41 = vrot.slane %v353_v30, %v97_v60  ;;  %v1753_v58 = vld [vmem:[#allocation8 + $0x98] sm:$0xff]   ;;  %v1754_v60 = vld [vmem:[#allocation8 + $0xa0] sm:$0xff]  }
 0x143   :  { %935 = vmatprep.subr.bf16.mxu0 %v1702_v42  ;;  %1519 = vmatprep.subr.bf16.mxu1 %v1703_v43 }
 0x146   :  { %936 = vmatpush1.bf16.msra.mxu0 %v1700_v45  ;;  %1520 = vmatpush3.bf16.msra.mxu1 %v1704_v46 }
 0x147   :  { %937 = vmatprep.subr.bf16.mxu0 %v1707_v47  ;;  %1521 = vmatprep.subr.bf16.mxu1 %v1708_v48 }
 0x14a   :  { %938 = vmatpush1.bf16.msra.mxu0 %v1705_v50  ;;  %1522 = vmatpush3.bf16.msra.mxu1 %v1709_v51  ;;  %v1750_v50 = vld [vmem:[#allocation8 + $0x80] sm:$0xff]  }
 0x14b   :  { %939 = vmatprep.subr.bf16.mxu0 %v1712_v52  ;;  %1529 = vmatprep.subr.bf16.mxu1 %v1734_v8  ;;  %v1751_v52 = vld [vmem:[#allocation8 + $0x88] sm:$0xff]  }
 0x14d   :  { %1037 = vmatmul.mubr.bf16.vlgmr.msra.gmra.mrb[8].mxu1 %v223_v53 }
 0x14e   :  { %940 = vmatpush1.bf16.msra.mxu0 %v1710_v54  ;;  %1530 = vmatpush3.bf16.msra.mxu1 %v1735_v9  ;;  %v1756_v54 = vld [vmem:[#allocation8 + $0xb0] sm:$0xff]   ;;  %v1484_v9 = vld [vmem:[%s2043_s7] ss:$0 sm:$0xff] }
 0x14f   :  { %941 = vmatprep.subr.bf16.mxu0 %v1715_v55  ;;  %1531 = vmatprep.subr.bf16.mxu1 %v1736_v10  ;;  %v1757_v55 = vld [vmem:[#allocation8 + $0xb8] sm:$0xff]  }
 0x152   :  { %942 = vmatpush1.bf16.msra.mxu0 %v1713_v56  ;;  %1532 = vmatpush3.bf16.msra.mxu1 %v1737_v11 }
 0x153   :  { %943 = vmatprep.subr.bf16.mxu0 %v1718_v59  ;;  %1533 = vmatprep.subr.bf16.mxu1 %v1738_v12 }
 0x156   :  { %944 = vmatpush1.bf16.msra.mxu0 %v1716_v61  ;;  %1534 = vmatpush3.bf16.msra.mxu1 %v1739_v13 }
 0x157   :  { %945 = vmatprep.subr.bf16.mxu0 %v1721_v62  ;;  %1535 = vmatprep.subr.bf16.mxu1 %v1740_v14 }
 0x15a   :  { %946 = vmatpush1.bf16.msra.mxu0 %v1719_v63  ;;  %1536 = vmatpush3.bf16.msra.mxu1 %v1741_v15 }
 0x15b   :  { %947 = vmatprep.subr.bf16.mxu0 %v1724_v0  ;;  %1537 = vmatprep.subr.bf16.mxu1 %v1742_v16 }
 0x15e   :  { %948 = vmatpush1.bf16.msra.mxu0 %v1722_v1  ;;  %1538 = vmatpush3.bf16.msra.mxu1 %v1743_v17 }
 0x15f   :  { %949 = vmatprep.subr.bf16.mxu0 %v1727_v2  ;;  %1539 = vmatprep.subr.bf16.mxu1 %v1744_v18  ;;  %v1459_v2 = vld [vmem:[%s2042_s6] ss:$0 sm:$0xff] }
 0x162   :  { %950 = vmatpush1.bf16.msra.mxu0 %v1725_v3  ;;  %1540 = vmatpush3.bf16.msra.mxu1 %v1745_v19 }
 0x163   :  { %951 = vmatprep.subr.bf16.mxu0 %v1730_v4  ;;  %1541 = vmatprep.subr.bf16.mxu1 %v1746_v20 }
 0x166   :  { %952 = vmatpush1.bf16.msra.mxu0 %v1728_v5  ;;  %1542 = vmatpush3.bf16.msra.mxu1 %v1747_v21 }
 0x167   :  { %953 = vmatprep.subr.bf16.mxu0 %v1733_v6  ;;  %1543 = vmatprep.subr.bf16.mxu1 %v1748_v22 }
 0x16a   :  { %954 = vmatpush1.bf16.msra.mxu0 %v1731_v7  ;;  %1544 = vmatpush3.bf16.msra.mxu1 %v1749_v23 }
 0x16b   :  { %1560 = vmatprep.subr.bf16.mxu1 %v1889_v24 }
 0x16d   :  { %956 = vmatmul.mubr.bf16.vlgmr.msra.gmra.mrb[4].mxu0 %v223_v53  ;;  %v1755_v53 = vld [vmem:[#allocation8 + $0xa8] sm:$0xff]  }
 0x200   :  { %v1501_v25 = vpop.f32.mrb[4].mxu1 }
 0x201   :  { %v1502_v26 = vpop.f32.mrb[5].mxu1 }
 0x202   :  { %v1503_v27 = vadd.f32 %v1502_v26, %v1501_v25  ;;  %v1504_v28 = vpop.f32.mrb[6].mxu1 }
 0x203   :  { %v1505_v29 = vpop.f32.mrb[7].mxu1 }
 0x204   :  { %v999_v35 = vadd.f32 %v1503_v27, %v366_v31 }
 0x220   :  { %v1523_v32 = vpop.f32.mrb[8].mxu1 }
 0x221   :  { %v1524_v33 = vpop.f32.mrb[9].mxu1 }
 0x222   :  { %v1525_v36 = vadd.f32 %v1524_v33, %v1523_v32  ;;  %v1526_v37 = vpop.f32.mrb[10].mxu1 }
 0x223   :  { %v1527_v38 = vpop.f32.mrb[11].mxu1 }
 0x224   :  { %v1039_v39 = vadd.f32 %v1525_v36, %v999_v35 }
 0x226   :  { %v1046_v56 = vmax.f32 %v1039_v39, 0.0 }
 0x228   :  { %v1049_v59 = vpack.c.bf16 %v1046_v56, %v1046_v56 }
 0x240   :  { %v957_v42 = vpop.f32.mrb[4].mxu0 }
 0x241   :  { %v1580_v43 = vadd.f32 %v957_v42, %v358_v40  ;;  %v959_v44 = vpop.f32.mrb[5].mxu0 }
 0x242   :  { %v1581_v45 = vadd.f32 %v959_v44, %v362_v41  ;;  %v961_v46 = vpop.f32.mrb[6].mxu0 }
 0x243   :  { %v1044_v47 = vmax.f32 %v1580_v43, 0.0  ;;  %v962_v34 = vpop.f32.mrb[7].mxu0 }
 0x244   :  { %v1045_v48 = vmax.f32 %v1581_v45, 0.0 }
 0x245   :  { %v1047_v51 = vpack.c.bf16 %v1044_v47, %v1044_v47 }
 0x246   :  { %v1048_v49 = vpack.c.bf16 %v1045_v48, %v1045_v48 }
 0x248   :  { %1281 = vmatprep.mubr.bf16.mxu1 %v1048_v49 }
 0x249   :  { %1282 = vmatmul.mubr.bf16.vlgmr.msra.gmra.mrb[12].mxu1 %v1047_v51 }
 0x24a   :  { %1561 = vmatpush3.bf16.msra.mxu1 %v1750_v50  ;;  %1576 = vmatprep.mubr.msk.bf16.mxu1 %vm1890_vm1, %v1889_v24 }
 0x24b   :  { %1562 = vmatprep.subr.bf16.mxu1 %v1889_v24 }
 0x24e   :  { %1563 = vmatpush3.bf16.msra.mxu1 %v1751_v52 }
 0x24f   :  { %1564 = vmatprep.subr.bf16.mxu1 %v1889_v24 }
 0x252   :  { %1565 = vmatpush3.bf16.msra.mxu1 %v1752_v57 }
 0x253   :  { %1566 = vmatprep.subr.bf16.mxu1 %v1889_v24 }
 0x256   :  { %1567 = vmatpush3.bf16.msra.mxu1 %v1753_v58 }
 0x257   :  { %1568 = vmatprep.subr.bf16.mxu1 %v1889_v24 }
 0x25a   :  { %1569 = vmatpush3.bf16.msra.mxu1 %v1754_v60 }
 0x25b   :  { %1570 = vmatprep.subr.bf16.mxu1 %v1889_v24 }
 0x25e   :  { %1571 = vmatpush3.bf16.msra.mxu1 %v1755_v53 }
 0x25f   :  { %1572 = vmatprep.subr.bf16.mxu1 %v1889_v24 }
 0x262   :  { %1573 = vmatpush3.bf16.msra.mxu1 %v1756_v54 }
 0x263   :  { %1574 = vmatprep.subr.bf16.mxu1 %v1889_v24 }
 0x266   :  { %1575 = vmatpush3.bf16.msra.mxu1 %v1757_v55 }
 0x269   :  { %1577 = vmatmul.mubr.bf16.vlgmr.msra.gmra.mrb[16].mxu1 %v1049_v59 }
 0x31c   :  { %v1545_v61 = vpop.f32.mrb[12].mxu1 }
 0x31d   :  { %v1546_v62 = vpop.f32.mrb[13].mxu1 }
 0x31e   :  { %v1547_v63 = vadd.f32 %v1546_v62, %v1545_v61  ;;  %v1548_v0 = vpop.f32.mrb[14].mxu1 }
 0x31f   :  { %v1549_v1 = vpop.f32.mrb[15].mxu1 }
 0x320   :  { %v1284_v3 = vadd.f32 %v1547_v63, %v1459_v2 }
 0x33c   :  { %v1323_v4 = vpop.f32.mrb[16].mxu1 }
 0x33d   :  { %v1324_v5 = vadd.f32 %v1323_v4, %v1284_v3  ;;  %v1578_v6 = vpop.f32.mrb[17].mxu1 }
 0x33e   :  { %v1326_v7 = vpop.f32.mrb[18].mxu1 }
 0x33f   :  { %1758 = vtanh.f32 %v1324_v5  ;;  %v1579_v8 = vpop.f32.mrb[19].mxu1 }
 0x349   :  { %v1759_v10 = vpop.eup %1758 }
 0x34a   :  { %v1337_v11 = vmul.f32 %v1759_v10, %v1484_v9 }
 0x34c   :  { %v1338_v12 = vpack.c.bf16 %v1337_v11, %v1337_v11 }
 0x34e   :  { %1339 = vst [vmem:[#allocation10] sm:$0xf] %v1338_v12 }
 0x34f   :  { %1859 = shalt.err (!%p1856_p8)
}
 0x350   :  { %s1860_s19 = scalar_lea.hbm %s2044_s8, 64 }
 0x351   :  { %p1861_p9 = scmp.ne.s32.totalorder %s2044_s8, %s1860_s19  ;;  %p1864_p10 = scmp.lt.u32.totalorder %s1860_s19, %s2044_s8 }
 0x353   :  { %p1866_p11 = pnand %p1864_p10, %p1861_p9 }
 0x355   :  { %1869 = shalt.err (!%p1866_p11)
}
 0x356   :  { %1349 = dma.vmem_to_hbm [thread:$0]  %s1347_s17, 64, %s2044_s8, [#allocation4]  }
 0x357   :  { %1876 = dma.done.wait [#allocation4], 64  }
 0x358   :  { %1877 = vsyncadd [#allocation4], 4294967232 }
 0x359   :  { %1353 = vsyncpa [#allocation3], 1 }
 0x35a   :  { %1354 = vsyncpa [#allocation6], 1 }
 0x35b   :  { %1355 = vsyncpa [#allocation9], 1 }
 0x35c   :  { %1356 = vsyncpa [#allocation4], 1 }

</bundles_post_ra>
